<compile_context>
chip_gen: v7x
topology: tpu7x:2x2x1
jax: 0.10.0
libtpu: 0.0.40
codegen_flags: <defaults>
</compile_context>

<pallas_src>
import math

import jax
import jax.numpy as jnp
from jax.experimental import pallas as pl
from jax.experimental.pallas import tpu as pltpu


# ----------------------------- helpers ---------------------------------------


def _round_up(n, m):
    return ((n + m - 1) // m) * m


def _pad2d(x, shape):
    return jnp.pad(x, [(0, s - d) for s, d in zip(shape, x.shape)])


def _largest_tile(total, cap):
    """Largest multiple of 128 that divides `total` and is <= cap (>=128)."""
    best = 128
    d = 128
    limit = min(total, max(cap, 128))
    while d <= limit:
        if total % d == 0:
            best = d
        d += 128
    return best


def _silu(x):
    # exact sigmoid (EUP exp + exact reciprocal); feeds returned tensors, so no approx.
    return x * pl.reciprocal(1.0 + jnp.exp(-x), approx=False)


# ----------------------------- kernels ----------------------------------------


def _time_embed_prologue_kernel(t_ref, f_ref, w1_ref, b1_ref, w2_ref, b2_ref,
                                temb_ref, a_ref, h1_scratch):
    """Sinusoid -> Linear1 -> SiLU (once, into scratch), then per-tile Linear2 (+SiLU)."""
    j = pl.program_id(0)

    @pl.when(j == 0)
    def _():
        # Timesteps(num_channels=F, flip_sin_to_cos=True, downscale_freq_shift=0)
        F = f_ref.shape[1]
        half = F // 2
        args = t_ref[...] * f_ref[...]                       # (B, F) f32; f_ref = [freqs|freqs]
        col = jax.lax.broadcasted_iota(jnp.int32, args.shape, 1)
        # flip_sin_to_cos=True -> [cos | sin], built with a lane select (no concat).
        sin_emb = jnp.where(col < half, jnp.cos(args), jnp.sin(args))

        h1 = jnp.dot(sin_emb.astype(w1_ref.dtype), w1_ref[...],
                     preferred_element_type=jnp.float32) + b1_ref[...]
        h1 = _silu(h1)
        h1_scratch[...] = h1.astype(h1_scratch.dtype)        # bf16, reused by every tile

    # Linear2 for this output-feature tile of `dim`.
    temb = jnp.dot(h1_scratch[...], w2_ref[...],
                   preferred_element_type=jnp.float32) + b2_ref[...]
    temb_ref[...] = temb
    # act_fn(SiLU), stored bf16 for the streaming projection kernel.
    a_ref[...] = _silu(temb).astype(a_ref.dtype)


def _time_proj_kernel(a_ref, w3_ref, b3_ref, proj_ref):
    """Pure streamed Linear: proj_tile = silu(temb) @ w3_tile + b3_tile."""
    proj_ref[...] = jnp.dot(a_ref[...], w3_ref[...],
                            preferred_element_type=jnp.float32) + b3_ref[...]


# ----------------------------- wrapper -----------------------------------------


def prepare_time_embedding_params(w1, b1, w2, b2, w3, b3, *, weight_dtype=jnp.bfloat16):
    """One-time (model-init) padding + cast.  Keeps the per-call path free of the
    f32->bf16 weight round-trip through HBM."""
    F, dim = w1.shape
    assert F % 2 == 0, "time_freq_dim must be even"
    proj_dim = w3.shape[1]
    dim_p = _round_up(dim, 128)
    proj_p = _round_up(proj_dim, 128)

    half = F // 2
    k = jnp.arange(half, dtype=jnp.float32)
    freqs = jnp.exp(-math.log(10000.0) * k / float(half))
    freqs_full = jnp.concatenate([freqs, freqs]).reshape(1, F)   # f[c] = freqs[c % half]

    return dict(
        F=F, dim=dim, proj_dim=proj_dim, dim_p=dim_p, proj_p=proj_p,
        freqs=freqs_full,
        w1=_pad2d(w1, (F, dim_p)).astype(weight_dtype),
        b1=_pad2d(b1.reshape(1, -1), (1, dim_p)).astype(jnp.float32),
        w2=_pad2d(w2, (dim_p, dim_p)).astype(weight_dtype),
        b2=_pad2d(b2.reshape(1, -1), (1, dim_p)).astype(jnp.float32),
        w3=_pad2d(w3, (dim_p, proj_p)).astype(weight_dtype),
        b3=_pad2d(b3.reshape(1, -1), (1, proj_p)).astype(jnp.float32),
    )


def time_embedding(params, timestep, *, tn_max=1024, tk_max=512,
                   vmem_limit_bytes=48 * 1024 * 1024):
    """timestep: (B,) float32. Returns (temb (B, dim), timestep_proj (B, time_proj_dim))."""
    B = timestep.shape[0]
    F = params["F"]
    dim_p, proj_p = params["dim_p"], params["proj_p"]
    t2d = timestep.astype(jnp.float32).reshape(B, 1)
    # TODO(synk): pass the timestep via SMEM scalar prefetch instead of a (B,1) VMEM block.

    # ---- call 1: sinusoid -> Linear1 -> SiLU -> Linear2 (w2 streamed over dim tiles) ----
    tk = _largest_tile(dim_p, tk_max)
    temb_pad, a = pl.pallas_call(
        _time_embed_prologue_kernel,
        out_shape=(jax.ShapeDtypeStruct((B, dim_p), jnp.float32),
                   jax.ShapeDtypeStruct((B, dim_p), jnp.bfloat16)),
        grid_spec=pltpu.PrefetchScalarGridSpec(
            num_scalar_prefetch=0,
            grid=(dim_p // tk,),
            in_specs=[
                pl.BlockSpec((B, 1), lambda j: (0, 0)),          # timestep column
                pl.BlockSpec((1, F), lambda j: (0, 0)),          # precomputed freqs
                pl.BlockSpec((F, dim_p), lambda j: (0, 0)),      # w1 (small, resident)
                pl.BlockSpec((1, dim_p), lambda j: (0, 0)),      # b1
                pl.BlockSpec((dim_p, tk), lambda j: (0, j)),     # w2 tile (streamed)
                pl.BlockSpec((1, tk), lambda j: (0, j)),         # b2 tile
            ],
            out_specs=(
                pl.BlockSpec((B, tk), lambda j: (0, j)),         # temb tile (f32)
                pl.BlockSpec((B, tk), lambda j: (0, j)),         # silu(temb) tile (bf16)
            ),
            scratch_shapes=[pltpu.VMEM((B, dim_p), jnp.bfloat16)],  # h1 = silu(lin1)
        ),
        compiler_params=pltpu.CompilerParams(
            # j>0 reads h1 produced at j==0 -> must stay sequential.
            dimension_semantics=("arbitrary",),
            vmem_limit_bytes=vmem_limit_bytes,
        ),
    )(t2d, params["freqs"], params["w1"], params["b1"], params["w2"], params["b2"])

    # ---- call 2: time_proj Linear, w3 streamed over output tiles ("parallel") ----
    # Budget-derived tile cap: Buffered(3) w3 tiles (bf16) + resident `a` + out tiles.
    budget = int(vmem_limit_bytes * 0.75)
    a_bytes = B * dim_p * 2
    denom = 3 * dim_p * 2 + 2 * B * 4 + 3 * 4      # 3x w3 col-bytes + 2x out + 3x b3 per lane
    tn_cap = max(128, ((budget - a_bytes) // denom) // 128 * 128)
    tn = _largest_tile(proj_p, min(tn_max, tn_cap))

    proj_pad = pl.pallas_call(
        _time_proj_kernel,
        out_shape=jax.ShapeDtypeStruct((B, proj_p), jnp.float32),
        grid_spec=pltpu.PrefetchScalarGridSpec(
            num_scalar_prefetch=0,
            grid=(proj_p // tn,),
            in_specs=[
                pl.BlockSpec((B, dim_p), lambda j: (0, 0)),      # silu(temb), bf16 resident
                pl.BlockSpec((dim_p, tn), lambda j: (0, j),
                             pipeline_mode=pl.Buffered(3)),      # w3 tile (dominant bytes)
                pl.BlockSpec((1, tn), lambda j: (0, j),
                             pipeline_mode=pl.Buffered(3)),      # b3 tile
            ],
            out_specs=pl.BlockSpec((B, tn), lambda j: (0, j)),
        ),
        compiler_params=pltpu.CompilerParams(
            # No carried state -> megacore (v7x) shards the w3 stream across both cores.
            dimension_semantics=("parallel",),
            vmem_limit_bytes=vmem_limit_bytes,
        ),
    )(a, params["w3"], params["b3"])

    return temb_pad[:, :params["dim"]], proj_pad[:, :params["proj_dim"]]


# ----------------------------- reference & test --------------------------------


def _reference(timestep, w1, b1, w2, b2, w3, b3):
    F = w1.shape[0]
    half = F // 2
    k = jnp.arange(half, dtype=jnp.float32)
    freqs = jnp.exp(-math.log(10000.0) * k / float(half))
    args = timestep.astype(jnp.float32)[:, None] * freqs[None, :]
    sin_emb = jnp.concatenate([jnp.cos(args), jnp.sin(args)], axis=-1)
    h1 = jax.nn.silu(sin_emb @ w1 + b1[None, :])
    temb = h1 @ w2 + b2[None, :]
    proj = jax.nn.silu(temb) @ w3 + b3[None, :]
    return temb, proj


if __name__ == "__main__":
    # Small shapes consistent with the module (exercise padding + both streamed grids).
    B = 8                   # batch of timesteps
    time_freq_dim = 32      # sinusoidal channels (even)
    dim = 192               # time embed dim (padded to 256 -> 2 w2 tiles at tk_max=128)
    time_proj_dim = 320     # projection dim (padded to 384 -> 3 w3 tiles at tn_max=128)

    key = jax.random.PRNGKey(0)
    k_t, k1, k2, k3, k4, k5, k6 = jax.random.split(key, 7)

    timestep = jax.random.uniform(k_t, (B,), jnp.float32, 0.0, 1000.0)

    # Deterministic synthetic parameters, stored as (in, out) / (out,).
    w1 = jax.random.normal(k1, (time_freq_dim, dim), jnp.float32) * 0.05
    b1 = jax.random.normal(k2, (dim,), jnp.float32) * 0.01
    w2 = jax.random.normal(k3, (dim, dim), jnp.float32) * 0.05
    b2 = jax.random.normal(k4, (dim,), jnp.float32) * 0.01
    w3 = jax.random.normal(k5, (dim, time_proj_dim), jnp.float32) * 0.05
    b3 = jax.random.normal(k6, (time_proj_dim,), jnp.float32) * 0.01

    # One-time weight preparation (model init), NOT part of the per-call hot path.
    params = prepare_time_embedding_params(w1, b1, w2, b2, w3, b3)
    params = jax.block_until_ready(params)

    # Small tn_max/tk_max here to exercise multi-step grids at these tiny shapes;
    # defaults (tk_max=512, tn_max=1024) are the tuned values for realistic dims.
    temb, proj = jax.block_until_ready(
        time_embedding(params, timestep, tn_max=128, tk_max=128))

    temb_ref, proj_ref = _reference(timestep, w1, b1, w2, b2, w3, b3)
    assert temb.shape == (B, dim) and proj.shape == (B, time_proj_dim)
    # bf16 weights inside the kernel vs f32 reference -> relaxed tolerance.
    assert jnp.allclose(temb, temb_ref, atol=3e-2, rtol=3e-2), \
        float(jnp.max(jnp.abs(temb - temb_ref)))
    assert jnp.allclose(proj, proj_ref, atol=3e-2, rtol=3e-2), \
        float(jnp.max(jnp.abs(proj - proj_ref)))

    print("KERNEL_OK")
</pallas_src>

<mosaic_0001>
module attributes {stable_mosaic.version = 11 : i64} {
  func.func @_time_embed_prologue_kernel(%arg0: i32, %arg1: memref<8x1xf32, #tpu.memory_space<vmem>>, %arg2: memref<1x32xf32, #tpu.memory_space<vmem>>, %arg3: memref<32x256xbf16, #tpu.memory_space<vmem>>, %arg4: memref<1x256xf32, #tpu.memory_space<vmem>>, %arg5: memref<256x128xbf16, #tpu.memory_space<vmem>>, %arg6: memref<1x128xf32, #tpu.memory_space<vmem>>, %arg7: memref<8x128xf32, #tpu.memory_space<vmem>>, %arg8: memref<8x128xbf16, #tpu.memory_space<vmem>>, %arg9: memref<8x256xbf16, #tpu.memory_space<vmem>>) attributes {dimension_semantics = [#tpu.dimension_semantics<arbitrary>], iteration_bounds = array<i64: 2>, scalar_prefetch = 0 : i64, scratch_operands = 1 : i64, tpu.core_type = #tpu.core_type<tc>, window_params = [{pipeline_mode = #tpu.pipeline_mode<synchronous>, transform_indices = @transform_0, window_bounds = array<i64: 8, 1>}, {pipeline_mode = #tpu.pipeline_mode<synchronous>, transform_indices = @transform_1, window_bounds = array<i64: 1, 32>}, {pipeline_mode = #tpu.pipeline_mode<synchronous>, transform_indices = @transform_2, window_bounds = array<i64: 32, 256>}, {pipeline_mode = #tpu.pipeline_mode<synchronous>, transform_indices = @transform_3, window_bounds = array<i64: 1, 256>}, {transform_indices = @transform_4, window_bounds = array<i64: 256, 128>}, {transform_indices = @transform_5, window_bounds = array<i64: 1, 128>}, {transform_indices = @transform_6, window_bounds = array<i64: 8, 128>}, {transform_indices = @transform_7, window_bounds = array<i64: 8, 128>}]} {
    %c0_i32 = arith.constant 0 : i32
    %0 = arith.cmpi eq, %arg0, %c0_i32 : i32
    %1 = arith.extui %0 : i1 to i32
    %c0_i32_0 = arith.constant 0 : i32
    %2 = arith.cmpi ne, %1, %c0_i32_0 : i32
    scf.if %2 {
      %c0_12 = arith.constant 0 : index
      %c0_13 = arith.constant 0 : index
      %19 = vector.load %arg1[%c0_12, %c0_13] : memref<8x1xf32, #tpu.memory_space<vmem>>, vector<8x1xf32>
      %c0_14 = arith.constant 0 : index
      %c0_15 = arith.constant 0 : index
      %20 = vector.load %arg2[%c0_14, %c0_15] : memref<1x32xf32, #tpu.memory_space<vmem>>, vector<1x32xf32>
      %21 = vector.broadcast %19 : vector<8x1xf32> to vector<8x32xf32>
      %22 = vector.broadcast %20 : vector<1x32xf32> to vector<8x32xf32>
      %23 = arith.mulf %21, %22 : vector<8x32xf32>
      %24 = tpu.iota {dimensions = array<i32: 1>} : vector<8x32xi32>
      %c16_i32 = arith.constant 16 : i32
      %25 = vector.broadcast %c16_i32 : i32 to vector<8x32xi32>
      %26 = arith.cmpi slt, %24, %25 : vector<8x32xi32>
      %27 = math.cos %23 : vector<8x32xf32>
      %28 = math.sin %23 : vector<8x32xf32>
      %29 = arith.select %26, %27, %28 : vector<8x32xi1>, vector<8x32xf32>
      %30 = arith.truncf %29 : vector<8x32xf32> to vector<8x32xbf16>
      %c0_16 = arith.constant 0 : index
      %c0_17 = arith.constant 0 : index
      %31 = vector.load %arg3[%c0_16, %c0_17] : memref<32x256xbf16, #tpu.memory_space<vmem>>, vector<32x256xbf16>
      %cst_18 = arith.constant dense<0.000000e+00> : vector<8x256xf32>
      %32 = tpu.matmul %30, %31, %cst_18 {dimension_numbers = #tpu.dot_dimension_numbers<[1], [0], [0], [1], [0, 0, 1, 1], [], []>} : vector<8x32xbf16>, vector<32x256xbf16>, vector<8x256xf32> -> vector<8x256xf32>
      %c0_19 = arith.constant 0 : index
      %c0_20 = arith.constant 0 : index
      %33 = vector.load %arg4[%c0_19, %c0_20] : memref<1x256xf32, #tpu.memory_space<vmem>>, vector<1x256xf32>
      %34 = vector.broadcast %33 : vector<1x256xf32> to vector<8x256xf32>
      %35 = arith.addf %32, %34 : vector<8x256xf32>
      %cst_21 = arith.constant 0.000000e+00 : f32
      %36 = vector.broadcast %cst_21 : f32 to vector<8x256xf32>
      %37 = arith.subf %36, %35 : vector<8x256xf32>
      %38 = math.exp %37 : vector<8x256xf32>
      %cst_22 = arith.constant 1.000000e+00 : f32
      %39 = vector.broadcast %cst_22 : f32 to vector<8x256xf32>
      %40 = arith.addf %39, %38 : vector<8x256xf32>
      %41 = tpu.reciprocal %40 : vector<8x256xf32> -> vector<8x256xf32>
      %42 = arith.mulf %35, %41 : vector<8x256xf32>
      %43 = arith.truncf %42 : vector<8x256xf32> to vector<8x256xbf16>
      %c0_23 = arith.constant 0 : index
      %c0_24 = arith.constant 0 : index
      %44 = vector.load %arg9[%c0_23, %c0_24] : memref<8x256xbf16, #tpu.memory_space<vmem>>, vector<8x256xbf16>
      tpu.vector_store %arg9[%c0_23, %c0_24], %43 {strides = array<i32>} : memref<8x256xbf16, #tpu.memory_space<vmem>>, vector<8x256xbf16>,
    } else {
    }
    %c0 = arith.constant 0 : index
    %c0_1 = arith.constant 0 : index
    %3 = vector.load %arg9[%c0, %c0_1] : memref<8x256xbf16, #tpu.memory_space<vmem>>, vector<8x256xbf16>
    %c0_2 = arith.constant 0 : index
    %c0_3 = arith.constant 0 : index
    %4 = vector.load %arg5[%c0_2, %c0_3] : memref<256x128xbf16, #tpu.memory_space<vmem>>, vector<256x128xbf16>
    %cst = arith.constant dense<0.000000e+00> : vector<8x128xf32>
    %5 = tpu.matmul %3, %4, %cst {dimension_numbers = #tpu.dot_dimension_numbers<[1], [0], [0], [1], [0, 0, 1, 1], [], []>} : vector<8x256xbf16>, vector<256x128xbf16>, vector<8x128xf32> -> vector<8x128xf32>
    %c0_4 = arith.constant 0 : index
    %c0_5 = arith.constant 0 : index
    %6 = vector.load %arg6[%c0_4, %c0_5] : memref<1x128xf32, #tpu.memory_space<vmem>>, vector<1x128xf32>
    %7 = vector.broadcast %6 : vector<1x128xf32> to vector<8x128xf32>
    %8 = arith.addf %5, %7 : vector<8x128xf32>
    %c0_6 = arith.constant 0 : index
    %c0_7 = arith.constant 0 : index
    %9 = vector.load %arg7[%c0_6, %c0_7] : memref<8x128xf32, #tpu.memory_space<vmem>>, vector<8x128xf32>
    tpu.vector_store %arg7[%c0_6, %c0_7], %8 {strides = array<i32>} : memref<8x128xf32, #tpu.memory_space<vmem>>, vector<8x128xf32>,
    %cst_8 = arith.constant 0.000000e+00 : f32
    %10 = vector.broadcast %cst_8 : f32 to vector<8x128xf32>
    %11 = arith.subf %10, %8 : vector<8x128xf32>
    %12 = math.exp %11 : vector<8x128xf32>
    %cst_9 = arith.constant 1.000000e+00 : f32
    %13 = vector.broadcast %cst_9 : f32 to vector<8x128xf32>
    %14 = arith.addf %13, %12 : vector<8x128xf32>
    %15 = tpu.reciprocal %14 : vector<8x128xf32> -> vector<8x128xf32>
    %16 = arith.mulf %8, %15 : vector<8x128xf32>
    %17 = arith.truncf %16 : vector<8x128xf32> to vector<8x128xbf16>
    %c0_10 = arith.constant 0 : index
    %c0_11 = arith.constant 0 : index
    %18 = vector.load %arg8[%c0_10, %c0_11] : memref<8x128xbf16, #tpu.memory_space<vmem>>, vector<8x128xbf16>
    tpu.vector_store %arg8[%c0_10, %c0_11], %17 {strides = array<i32>} : memref<8x128xbf16, #tpu.memory_space<vmem>>, vector<8x128xbf16>,
    return
  }
  func.func @transform_0(%arg0: i32) -> (i32, i32) {
    %c0_i32 = arith.constant 0 : i32
    %c0_i32_0 = arith.constant 0 : i32
    %c0_i32_1 = arith.constant 0 : i32
    return %c0_i32, %c0_i32_0 : i32, i32
  }
  func.func @transform_1(%arg0: i32) -> (i32, i32) {
    %c0_i32 = arith.constant 0 : i32
    %c0_i32_0 = arith.constant 0 : i32
    %c0_i32_1 = arith.constant 0 : i32
    return %c0_i32, %c0_i32_0 : i32, i32
  }
  func.func @transform_2(%arg0: i32) -> (i32, i32) {
    %c0_i32 = arith.constant 0 : i32
    %c0_i32_0 = arith.constant 0 : i32
    %c0_i32_1 = arith.constant 0 : i32
    return %c0_i32, %c0_i32_0 : i32, i32
  }
  func.func @transform_3(%arg0: i32) -> (i32, i32) {
    %c0_i32 = arith.constant 0 : i32
    %c0_i32_0 = arith.constant 0 : i32
    %c0_i32_1 = arith.constant 0 : i32
    return %c0_i32, %c0_i32_0 : i32, i32
  }
  func.func @transform_4(%arg0: i32) -> (i32, i32) {
    %c0_i32 = arith.constant 0 : i32
    %c0_i32_0 = arith.constant 0 : i32
    return %c0_i32, %arg0 : i32, i32
  }
  func.func @transform_5(%arg0: i32) -> (i32, i32) {
    %c0_i32 = arith.constant 0 : i32
    %c0_i32_0 = arith.constant 0 : i32
    return %c0_i32, %arg0 : i32, i32
  }
  func.func @transform_6(%arg0: i32) -> (i32, i32) {
    %c0_i32 = arith.constant 0 : i32
    %c0_i32_0 = arith.constant 0 : i32
    return %c0_i32, %arg0 : i32, i32
  }
  func.func @transform_7(%arg0: i32) -> (i32, i32) {
    %c0_i32 = arith.constant 0 : i32
    %c0_i32_0 = arith.constant 0 : i32
    return %c0_i32, %arg0 : i32, i32
  }
}

</mosaic_0001>

<bundles_post_ra>
// kernel: tpu_custom_call.1
= control target key start
LH: loop header
LB: loop body
LE: loop exit
PB: predicated region body
PF: predicated region fallthrough
CT: control target
= control target key end

     0   :  { %13 = vsyncpa [#allocation4], 0  ;;  %s1732_s0 = inlined_call_operand.vmem [shape: f32[8,1], index: 0, kind: input, shape index: {}]   ;;  %s1733_s1 = inlined_call_operand.vmem [shape: f32[1,32], index: 1, kind: input, shape index: {}]   ;;  %s1734_s2 = inlined_call_operand.hbm [shape: bf16[32,256], index: 2, kind: input, shape index: {}]   ;;  %s1735_s3 = inlined_call_operand.vmem [shape: f32[1,256], index: 3, kind: input, shape index: {}]   ;;  %s1736_s4 = inlined_call_operand.hbm [shape: bf16[256,256], index: 4, kind: input, shape index: {}]   ;;  %s1737_s5 = inlined_call_operand.vmem [shape: f32[1,256], index: 5, kind: input, shape index: {}]   ;;  %s1738_s6 = inlined_call_operand.hbm [shape: f32[8,256], index: 6, kind: output, shape index: {0}]   ;;  %s1739_s7 = inlined_call_operand.hbm [shape: bf16[8,256], index: 7, kind: output, shape index: {1}]  }
   0x1   :  { %14 = vsyncpa [#allocation7], 0 }
   0x2   :  { %16 = vsyncpa [#allocation7 + $0x1], 0 }
   0x3   :  { %17 = vsyncpa [#allocation5], 0 }
   0x4   :  { %19 = vsyncpa [#allocation5 + $0x1], 0 }
   0x5   :  { %20 = vsyncpa [#allocation10], 0 }
   0x6   :  { %22 = vsyncpa [#allocation10 + $0x1], 0  ;;  %s1426_s24 = smov 0   ;;  %s1428_s25 = smov 0  }
   0x7   :  { %s1430_s26 = smov 0   ;;  %s1432_s27 = smov 0  }
   0x8 LB: > { %s1447_s28 = sadd.s32 4294967295, %s1369_s27   ;;  %s1016_s29 = sadd.s32 4294967294, %s1369_s27   ;;  %s1369_s27 = sphi %s1432_s27, %s1768_s27   ;;  %s1365_s26 = sphi %s1430_s26, %s1767_s26   ;;  %s1361_s25 = sphi %s1428_s25, %s1766_s25   ;;  %s1357_s24 = sphi %s1426_s24, %s1765_s24  }
   0x9   : > { %s1451_s30 = sadd.s32 1, %s1369_s27   ;;  %s119_s8 = sadd.s32 1, %s1365_s26 }
   0xa   : > { %s116_s9 = ssub.s32 %s1369_s27, %s1451_s30  ;;  %p126_p0 = scmp.ne.s32.totalorder %s1365_s26, %s1361_s25 }
   0xb   : > { %p117_p1 = scmp.eq.s32.totalorder %s116_s9, 0  ;;  %p127_p2 = scmp.eq.s32.totalorder %s1369_s27, 0 }
   0xc   : > { %p132_p3 = scmp.ne.s32.totalorder %s1361_s25, %s1357_s24  ;;  %p1740_p4 = scmp.eq.s32.totalorder %s1447_s28, 0 }
   0xd   : > { %s1463_s10 = scalar_select %p117_p1, %s1365_s26, %s119_s8  }
   0xe   : > { %p1465_p5 = por %p127_p2, %p126_p0  ;;  %p1471_p6 = por %p1740_p4, %p132_p3 }
   0xf   : > { %1745 = sst [smem:[#allocation15_spill]] %s1463_s10  ;;  %p182_p7 = scmp.eq.s32.totalorder %s1447_s28, 1 }
  0x10   : > { %s1746_s11 = scalar_select %p1465_p5, 1, 0 }
  0x11   : > { %s1747_s12 = scalar_select %p1471_p6, 1, 0 }
  0x12   : > { %p188_p8 = scmp.eq.s32.totalorder %s1016_s29, 1  ;;  %p1017_p9 = scmp.ge.s32.totalorder %s1369_s27, 1 }
  0x13   : > { %p221_p10 = scmp.lt.s32.totalorder %s1369_s27, 3  ;;  %p1478_p11 = por %p182_p7, %p126_p0 }
  0x14   : > { %p1482_p12 = por %p188_p8, %p132_p3  ;;  %s1371_s16 = smov [#allocation3]  }
  0x15   : > { %s1748_s13 = scalar_select %p1478_p11, 1, 0 }
  0x16   : > { %s1749_s14 = scalar_select %p1482_p12, 1, 0 }
  0x17   : > { %p1486_p13 = pnand %p1017_p9, %p221_p10  ;;  %s239_s17 = sshll.u32 %s1371_s16, 4  ;;  %s240_s17 = int_to_ptr.vmem [resolvable:$true] %s239_s17 }
  0x18   : > { %s256_s19 = sand.u32 1, %s1365_s26   ;;  %s1209_s22 = scalar_lea.hbm %s1734_s2, 512 }
  0x19   : > { %s1750_s15 = scalar_select %p1486_p13, 1, 0 }
  0x1a   : > { %p1105_p2 = pneg %p1486_p13  ;;  %p1210_p8 = scmp.ne.s32.totalorder %s1734_s2, %s1209_s22 }
  0x1c   : > { %p1495_p0 = pnand %p1105_p2, %p1740_p4  ;;  %p1216_p2 = scmp.lt.u32.totalorder %s1209_s22, %s1734_s2 }
  0x1e   : > { %p1211_p9 = pneg %p1495_p0 }
  0x20   : > { %p1212_p10 = pnand %p1211_p9, %p1210_p8 }
  0x22   : > { %p1213_p1 = pneg %p1212_p10 }
  0x24   : > { %p1218_p4 = pnand %p1216_p2, %p1213_p1 }
  0x26   : > { %1221 = shalt.err (!%p1218_p4)
}
  0x27   : > { %s1222_s16 = scalar_lea.vmem %s240_s17, 512  ;;  %p1230_p11 = scmp.lt.s32.totalorder %s240_s17, %s240_s17 }
  0x28   : > { %p1223_p3 = scmp.ne.s32.totalorder %s240_s17, %s1222_s16  ;;  %p1231_p6 = scmp.lt.s32.totalorder %s1222_s16, %s1222_s16 }
  0x2a   : > { %p1225_p7 = pnand %p1223_p3, %p1211_p9  ;;  %p1232_p13 = por %p1231_p6, %p1230_p11 }
  0x2c   : > { %p1226_p12 = pneg %p1225_p7 }
  0x2e   : > { %p1233_p5 = pnand %p1232_p13, %p1226_p12 }
  0x30   : > { %1236 = shalt.err (!%p1233_p5)
}
  0x31   : > { %s1744_s20 = smov 128   ;;  %s1373_s21 = smov 8  }
  0x32   : > { %1108 = dma.hbm_to_vmem [thread:$0]  (!%p1495_p0), %s1734_s2, 512, %s240_s17, [#allocation4], %s1744_s20, %s1744_s20, %s1373_s21  }
  0x33   : > { %p1752_p4 = scmp.ne.s32.totalorder %s1746_s11, 0  ;;  %p1753_p1 = scmp.lt.s32.totalorder %s1369_s27, 2 }
  0x34   : > { %s1020_s8 = sshll.u32 %s256_s19, 7  ;;  %s1021_s9 = sshll.u32 %s1369_s27, 6 }
  0x35   : > { %p1524_p3 = pnand %p1753_p1, %p1752_p4  ;;  %s1532_s18 = scalar_lea.hbm %s1736_s4, %s1021_s9 }
  0x36   : > { %s260_s17 = scalar_lea.vmem [#allocation6], %s1020_s8  ;;  %s1536_s21 = scalar_lea.sflag [#allocation7], %s256_s19 }
  0x37   : > { %s266_s11 = sshll.u32 %s260_s17, 4  ;;  %s1237_s22 = scalar_lea.hbm %s1532_s18, 2048  ;;  %s1534_s11 = int_to_ptr.vmem [resolvable:$true] %s266_s11 }
  0x38   : > { %p1238_p5 = scmp.ne.s32.totalorder %s1532_s18, %s1237_s22  ;;  %p1239_p6 = pneg %p1524_p3 }
  0x39   : > { %s1242_s9 = scalar_lea.hbm %s1736_s4, 4096  ;;  %p1243_p13 = scmp.lt.u32.totalorder %s1532_s18, %s1736_s4 }
  0x3a   : > { %p1240_p11 = pnand %p1239_p6, %p1238_p5  ;;  %p1244_p0 = scmp.lt.u32.totalorder %s1242_s9, %s1237_s22 }
  0x3b   : > { %p1246_p8 = scmp.lt.u32.totalorder %s1237_s22, %s1532_s18 }
  0x3c   : > { %p1241_p12 = pneg %p1240_p11  ;;  %p1245_p7 = por %p1244_p0, %p1243_p13 }
  0x3e   : > { %p1247_p9 = por %p1246_p8, %p1245_p7 }
  0x40   : > { %p1248_p10 = pnand %p1247_p9, %p1241_p12 }
  0x42   : > { %1251 = shalt.err (!%p1248_p10)
}
  0x43   : > { %s1252_s19 = scalar_lea.vmem %s1534_s11, 2048  ;;  %s1374_s8 = smov [#allocation6]  }
  0x44   : > { %p1253_p2 = scmp.ne.s32.totalorder %s1534_s11, %s1252_s19  ;;  %s1257_s17 = sshll.u32 %s1374_s8, 4  ;;  %s1258_s17 = int_to_ptr.vmem [resolvable:$false] %s1257_s17 }
  0x45   : > { %s1259_s20 = scalar_lea.vmem %s1258_s17, 4096  ;;  %p1260_p5 = scmp.lt.s32.totalorder %s1534_s11, %s1258_s17 }
  0x46   : > { %p1255_p4 = pnand %p1253_p2, %p1239_p6  ;;  %p1261_p11 = scmp.lt.s32.totalorder %s1259_s20, %s1252_s19 }
  0x48   : > { %p1256_p1 = pneg %p1255_p4  ;;  %p1262_p13 = por %p1261_p11, %p1260_p5 }
  0x4a   : > { %p1263_p0 = pnand %p1262_p13, %p1256_p1 }
  0x4c   : > { %1266 = shalt.err (!%p1263_p0)
}
  0x4d   : > { %s1375_s22 = smov 64   ;;  %s1376_s10 = smov 4  }
  0x4e   : > { %s1755_s23 = smov 128   ;;  %p1756_p6 = scmp.ne.s32.totalorder %s1750_s15, 0 }
  0x4f   : > { %1112 = dma.hbm_to_vmem [thread:$0]  (!%p1524_p3), %s1532_s18, 2048, %s1534_s11, %s1536_s21, %s1755_s23, %s1375_s22, %s1376_s10  }
  0x50   : > { %284 = sbr.rel (%p1756_p6) target bundleno = 865 (0x361), region = 44  ;;  %p1757_p12 = scmp.eq.s32.totalorder (!%p1756_p6), %s1447_s28, 0 }
  0x57   : > { %1340 = dma.done.wait (%p1757_p12), [#allocation4], 512   ;;  %p1758_p7 = pmov %p1757_p12 }
  0x58   : > { %s1572_s9 = sand.u32 1, %s1361_s25   ;;  %p1759_p3 = scmp.ne.s32.totalorder %s1747_s12, 0 }
  0x59   : > { %1342 = vsyncadd (%p1758_p7), [#allocation4], 4294966784  ;;  %s1024_s16 = sshll.u32 %s1572_s9, 7  ;;  %s291_s19 = scalar_lea.sflag [#allocation7], %s1572_s9 }
  0x5a   : > { %s1576_s29 = scalar_lea.vmem [#allocation6], %s1024_s16 }
  0x5b   : > { %1344 = dma.done.wait (%p1759_p3), %s291_s19, 2048  }
  0x5c   : > { %1346 = vsyncadd (%p1759_p3), %s291_s19, 4294965248  ;;  %s1025_s15 = sshll.u32 %s1572_s9, 3  ;;  %s1026_s18 = sshll.u32 %s1572_s9, 2 }
  0x5d   : > { %p333_p8 = scmp.lt.s32.totalorder %s1447_s28, 1  ;;  %s1592_s20 = scalar_lea.vmem [#allocation8], %s1025_s15 }
  0x5e   : > { %s1594_s22 = scalar_lea.vmem [#allocation9], %s1026_s18  ;;  %p1760_p9 = scmp.ne.s32.totalorder %s1447_s28, 0 }
  0x5f   : > { %s1586_s11 = scalar_select %p333_p8, %s1447_s28, 1 }
  0x60   : > { %340 = sbr.rel (%p1760_p9) target bundleno = 558 (0x22e), region = 56  ;;  %v341_v0 = vld [vmem:[%s1732_s0] sm:$0xff] (!%p1760_p9)  ;;  %v1377_v1 = vmov (!%p1760_p9), 0   ;;  %v1169_v2 = vld [vmem:[#allocation3 + $0x4] ss:$8 sps:$4 sm:$0xff] (!%p1760_p9)  }
  0x61   : > { %s335_s17 = scalar_lea.vmem %s1737_s5, %s1586_s11  ;;  %1168 = vset.pattern.permute.xlu0 (!%p1760_p9), %v1377_v1  ;;  %639 = vmatprep.mubr.bf16.mxu0 (!%p1760_p9), %v1377_v1  ;;  %v1171_v3 = vld [vmem:[#allocation3] ss:$8 sps:$4 sm:$0xff] (!%p1760_p9)   ;;  %v1172_v4 = vld [vmem:[#allocation3 + $0x14] ss:$8 sps:$4 sm:$0xff] (!%p1760_p9)   ;;  %v1174_v5 = vld [vmem:[#allocation3 + $0x10] ss:$8 sps:$4 sm:$0xff] (!%p1760_p9)  }
  0x62   : > { %345 = vperm.xlu0 (!%p1760_p9), %1168, %v341_v0   ;;  %607 = vmatprep.subr.bf16.mxu0 (!%p1760_p9), %v1169_v2  ;;  %v1028_v6 = vld [vmem:[%s1733_s1] ss:$0 sm:$0xff] (!%p1760_p9)  ;;  %v1378_v19 = vmov (!%p1760_p9), 683565275   ;;  %v1379_v21 = vmov (!%p1760_p9), 2475754826  }
  0x63   : > { %608 = vmatpush1.bf16.msra.mxu0 (!%p1760_p9), %v1171_v3  ;;  %v1380_v24 = vmov (!%p1760_p9), 2131351028   ;;  %v1381_v27 = vmov (!%p1760_p9), 2102212464   ;;  %v1382_v30 = vmov (!%p1760_p9), 920167782  }
  0x64   : > { %609 = vmatprep.subr.bf16.mxu0 (!%p1760_p9), %v1172_v4  ;;  %v1383_v33 = vmov (!%p1760_p9), 1326507024  }
  0x67   : > { %610 = vmatpush1.bf16.msra.mxu0 %v1174_v5 }
  0xe1   : > { %v346_v7 = vpop.permute.xlu0 %345 }
  0xe2   : > { %v1604_v8 = vmul.f32 %v1028_v6, %v346_v7 }
  0xe4   : > { %v361_v9 = vand.u32 2139095040, %v1604_v8  ;;  %v358_v13 = vand.u32 2147483647, %v1604_v8  ;;  %vm360_vm7 = vcmp.lt.s32.totalorder %v1604_v8, 0 }
  0xe6   : > { %v362_v10 = vshrl.u32 %v361_v9, 23  ;;  %v365_v16 = vand.u32 8388607, %v358_v13  ;;  %vm359_vm8 = vcmp.le.f32.partialorder %v358_v13, 0.7853982 }
  0xe8   : > { %v1029_v11 = vadd.s32 4294967169, %v362_v10  ;;  %v366_v35 = vor.u32 8388608, %v365_v16 }
  0xea   : > { %v368_v12 = vadd.s32 1, %v1029_v11  ;;  %v406_v49 = vshll.u32 %v366_v35, 8 }
  0xec   : > { %vm369_vm0 = vcmp.gt.s32.totalorder %v368_v12, 0 }
  0xed   : > { %v370_v14 = vsel %vm369_vm0, %v368_v12, 0  ;;  %vm450_vm0 = vweird.f32 %v1604_v8 }
  0xee   : > { %v372_v15 = vand.u32 31, %v370_v14  ;;  %v371_v18 = vshrl.u32 %v370_v14, 5 }
  0xf0   : > { %v373_v17 = vsub.s32 32, %v372_v15  ;;  %v375_v20 = vshll.u32 %v1378_v19, %v372_v15  ;;  %v378_v22 = vshll.u32 %v1379_v21, %v372_v15  ;;  %v381_v26 = vshll.u32 %v1380_v24, %v372_v15 }
  0xf1   : > { %v384_v29 = vshll.u32 %v1381_v27, %v372_v15  ;;  %v387_v32 = vshll.u32 %v1382_v30, %v372_v15  ;;  %vm390_vm1 = vcmp.lt.s32.totalorder %v371_v18, 1  ;;  %vm393_vm2 = vcmp.lt.s32.totalorder %v371_v18, 4 }
  0xf2   : > { %v376_v23 = vshrl.u32 %v1379_v21, %v373_v17  ;;  %v379_v25 = vshrl.u32 %v1380_v24, %v373_v17  ;;  %v382_v28 = vshrl.u32 %v1381_v27, %v373_v17  ;;  %v385_v31 = vshrl.u32 %v1382_v30, %v373_v17 }
  0xf3   : > { %v388_v34 = vshrl.u32 %v1383_v33, %v373_v17  ;;  %v374_v44 = vshrl.u32 %v1378_v19, %v373_v17  ;;  %vm392_vm3 = vcmp.lt.s32.totalorder %v371_v18, 3  ;;  %vm391_vm4 = vcmp.lt.s32.totalorder %v371_v18, 2 }
  0xf4   : > { %v377_v36 = vor.u32 %v376_v23, %v375_v20  ;;  %v380_v37 = vor.u32 %v379_v25, %v378_v22  ;;  %v383_v38 = vor.u32 %v382_v28, %v381_v26  ;;  %v386_v39 = vor.u32 %v385_v31, %v384_v29 }
  0xf5   : > { %v389_v40 = vor.u32 %v388_v34, %v387_v32  ;;  %v355_v29 = vlaneseq }
  0xf6   : > { %v395_v41 = vsel %vm393_vm2, %v383_v38, 2102212464  ;;  %v398_v42 = vsel %vm390_vm1, %v377_v36, %v380_v37  ;;  %v402_v43 = vsel %vm390_vm1, %v380_v37, %v383_v38  ;;  %v399_v45 = vsel %vm393_vm2, %v386_v39, 920167782 }
  0xf7   : > { %v403_v46 = vsel %vm393_vm2, %v389_v40, 1326507024  ;;  %v400_v47 = vsel %vm392_vm3, %v383_v38, %v399_v45  ;;  %v394_v50 = vsel %vm390_vm1, %v374_v44, %v377_v36  ;;  %v396_v51 = vsel %vm392_vm3, %v380_v37, %v395_v41 }
  0xf8   : > { %v404_v48 = vsel %vm392_vm3, %v386_v39, %v403_v46  ;;  %v401_v52 = vsel %vm391_vm4, %v398_v42, %v400_v47  ;;  %v397_v58 = vsel %vm391_vm4, %v394_v50, %v396_v51  ;;  %v356_v32 = vand.u32 127, %v355_v29 }
  0xf9   : > { %v405_v53 = vsel %vm391_vm4, %v402_v43, %v404_v48  ;;  %v1613_v56 = vmul.u32.u64.low %v406_v49, %v401_v52  ;;  %v1614_v57 = vmul.u32.u64.high %v406_v49, %v401_v52, %v1613_v56  ;;  %v413_v60 = vmul.u32 %v406_v49, %v397_v58  ;;  %v571_v48 = vld [vmem:[%s1735_s3] sm:$0x3] }
  0xfa   : > { %v1610_v54 = vmul.u32.u64.low %v406_v49, %v405_v53  ;;  %v1611_v55 = vmul.u32.u64.high %v406_v49, %v405_v53, %v1610_v54  ;;  %vm357_vm9 = vcmp.lt.s32.totalorder %v356_v32, 16  ;;  %vm603_vm1 = vcmask 261120  }
  0xfb   : > { %v416_v59 = vadd.s32 1, %v1614_v57  ;;  %v574_v46 = vshrl.u32 %v355_v29, 7 }
  0xfc   : > { %vm415_vm5 = vc.u32 %v1611_v55, %v1613_v56  ;;  %v414_v9 = vadd.s32 %v1613_v56, %v1611_v55 }
  0xfd   : > { %v417_v61 = vsel %vm415_vm5, %v416_v59, %v1614_v57  ;;  %v575_v47 = vsub.s32 0, %v574_v46  ;;  %v579_v49 = vsub.s32 1, %v574_v46 }
  0xfe   : > { %v418_v62 = vadd.s32 %v417_v61, %v413_v60 }
  0xff   : > { %v576_v50 = vrot.slane %v571_v48, %v575_v47  ;;  %v580_v51 = vrot.slane %v571_v48, %v579_v49 }
 0x100   : > { %v419_v63 = vadd.s32 536870912, %v418_v62 }
 0x102   : > { %v420_v0 = vshrl.u32 %v419_v63, 30 }
 0x104   : > { %v421_v1 = vshll.u32 %v420_v0, 30  ;;  %v444_v22 = vsub.s32 4, %v420_v0 }
 0x106   : > { %v422_v2 = vsub.s32 %v418_v62, %v421_v1  ;;  %v445_v25 = vsel %vm360_vm7, %v444_v22, %v420_v0 }
 0x107   : > { %v447_v27 = vsel %vm359_vm8, 0, %v445_v25 }
 0x108   : > { %v424_v3 = vsub.s32 0, %v422_v2  ;;  %v554_v28 = vadd.s32 3, %v447_v27  ;;  %v451_v30 = vand.u32 3, %v447_v27 }
 0x10a   : > { %v1030_v4 = vmin.u32 %v424_v3, %v422_v2  ;;  %v555_v31 = vand.u32 3, %v554_v28  ;;  %vm456_vm10 = vcmp.eq.s32.totalorder %v451_v30, 2  ;;  %vm453_vm12 = vcmp.eq.s32.totalorder %v451_v30, 0 }
 0x10b   : > { %vm452_vm14 = vcmp.lt.s32.totalorder %v451_v30, 2 }
 0x10c   : > { %v426_v5 = vclz %v1030_v4  ;;  %vm560_vm11 = vcmp.eq.s32.totalorder %v555_v31, 2  ;;  %vm557_vm13 = vcmp.eq.s32.totalorder %v555_v31, 0  ;;  %vm556_vm15 = vcmp.lt.s32.totalorder %v555_v31, 2 }
 0x10e   : > { %v1031_v6 = vadd.s32 4294967294, %v426_v5 }
 0x110   : > { %vm1032_vm6 = vcmp.lt.s32.totalorder %v1031_v6, 0 }
 0x111   : > { %v429_v7 = vsel %vm1032_vm6, 0, %v1031_v6 }
 0x112   : > { %v430_v10 = vsub.s32 32, %v429_v7  ;;  %v434_v11 = vsub.s32 4294967266, %v429_v7  ;;  %v431_v12 = vshll.u32 %v422_v2, %v429_v7 }
 0x114   : > { %v432_v14 = vshrl.u32 %v414_v9, %v430_v10  ;;  %v435_v15 = vadd.s32 127, %v434_v11 }
 0x116   : > { %v433_v16 = vor.u32 %v432_v14, %v431_v12  ;;  %v436_v17 = vshll.u32 %v435_v15, 23 }
 0x118   : > { %v437_v18 = vor.u32 4788187, %v436_v17  ;;  %v440_v20 = vcvt.s32.f32 %v433_v16 }
 0x11a   : > { %v438_v19 = vand.u32 2147483647, %v437_v18 }
 0x11c   : > { %v441_v21 = vmul.f32 %v440_v20, %v438_v19 }
 0x11e   : > { %v442_v23 = vxor.u32 2147483648, %v441_v21 }
 0x120   : > { %v443_v24 = vsel %vm360_vm7, %v442_v23, %v441_v21 }
 0x121   : > { %v446_v26 = vsel %vm359_vm8, %v1604_v8, %v443_v24 }
 0x122   : > { %1175 = vcosq.f32 %v446_v26 }
 0x123   : > { %1177 = vsinq.f32 %v446_v26 }
 0x12c   : > { %v1176_v33 = vpop.eup %1175 }
 0x12d   : > { %v1178_v34 = vpop.eup %1177  ;;  %v457_v35 = vxor.u32 2147483648, %v1176_v33 }
 0x12e   : > { %v454_v36 = vxor.u32 2147483648, %v1178_v34 }
 0x12f   : > { %v458_v13 = vsel %vm456_vm10, %v457_v35, %v1178_v34  ;;  %v562_v37 = vsel %vm560_vm11, %v457_v35, %v1178_v34 }
 0x130   : > { %v455_v38 = vsel %vm453_vm12, %v1176_v33, %v454_v36  ;;  %v559_v39 = vsel %vm557_vm13, %v1176_v33, %v454_v36 }
 0x131   : > { %v459_v40 = vsel %vm452_vm14, %v455_v38, %v458_v13  ;;  %v563_v41 = vsel %vm556_vm15, %v559_v39, %v562_v37 }
 0x132   : > { %v460_v42 = vsel %vm450_vm0, nan, %v459_v40  ;;  %v564_v43 = vsel %vm450_vm0, nan, %v563_v41 }
 0x133   : > { %v565_v44 = vsel %vm357_vm9, %v460_v42, %v564_v43 }
 0x134   : > { %v566_v45 = vpack.c.bf16 %v565_v44, %v565_v44 }
 0x136   : > { %1041 = vmatmul.mubr.msk.bf16.vlgmr.msra.gmra.mrb[0].mxu0 %vm603_vm1, %v566_v45 }
 0x209   : > { %v641_v52 = vpop.f32.mrb[0].mxu0 }
 0x20a   : > { %v642_v8 = vadd.f32 %v641_v52, %v576_v50  ;;  %v643_v53 = vpop.f32.mrb[1].mxu0 }
 0x20b   : > { %v644_v54 = vadd.f32 %v643_v53, %v580_v51  ;;  %v645_v55 = vpop.f32.mrb[2].mxu0 }
 0x20c   : > { %v648_v56 = vsub.f32 0.0, %v642_v8  ;;  %v646_v57 = vpop.f32.mrb[3].mxu0 }
 0x20d   : > { %v649_v58 = vsub.f32 0.0, %v644_v54 }
 0x20e   : > { %v650_v59 = vmul.f32 1.442695, %v648_v56 }
 0x20f   : > { %v652_v60 = vmul.f32 1.442695, %v649_v58 }
 0x210   : > { %1179 = vpow2.f32 %v650_v59 }
 0x211   : > { %1181 = vpow2.f32 %v652_v60 }
 0x21a   : > { %v1180_v61 = vpop.eup %1179 }
 0x21b   : > { %v1182_v62 = vpop.eup %1181  ;;  %v654_v63 = vadd.f32 1.0, %v1180_v61 }
 0x21c   : > { %v655_v0 = vadd.f32 1.0, %v1182_v62 }
 0x21d   : > { %1183 = vrcp.f32 %v654_v63 }
 0x21e   : > { %1185 = vrcp.f32 %v655_v0 }
 0x227   : > { %v1184_v1 = vpop.eup %1183 }
 0x228   : > { %v1186_v2 = vpop.eup %1185  ;;  %v658_v3 = vmul.f32 %v1184_v1, %v642_v8 }
 0x229   : > { %v659_v4 = vmul.f32 %v1186_v2, %v644_v54 }
 0x22b   : > { %v1068_v5 = vpack.c.bf16 %v659_v4, %v658_v3 }
 0x22d   : > { %668 = vst [vmem:[#allocation2] sm:$0xff] %v1068_v5 }
 0x22e PF: > { %v1187_v6 = vld [vmem:[%s1576_s29 + $0x40] sm:$0xff]   ;;  %v1189_v9 = vld [vmem:[%s1576_s29 + $0x48] sm:$0xff]   ;;  %v1191_v11 = vld [vmem:[%s1576_s29 + $0x50] sm:$0xff]   ;;  %s1064_s8 = sshll.u32 %s1447_s28, 7  ;;  %s880_s12 = sshll.u32 %s1592_s20, 4  ;;  %s1657_s12 = int_to_ptr.vmem [resolvable:$true] %s880_s12 }
 0x22f   : > { %v1188_v7 = vld [vmem:[%s1576_s29] sm:$0xff]   ;;  %1069 = vmatprep.subr.bf16.mxu0 %v1187_v6  ;;  %v1190_v10 = vld [vmem:[%s1576_s29 + $0x8] sm:$0xff]   ;;  %v1192_v12 = vld [vmem:[%s1576_s29 + $0x10] sm:$0xff]   ;;  %s1655_s23 = scalar_lea.hbm %s1738_s6, %s1064_s8  ;;  %s862_s11 = scalar_lea.sflag [#allocation5], %s1572_s9 }
 0x230   : > { %1070 = vmatpush3.bf16.msra.mxu0 %v1188_v7  ;;  %v1193_v14 = vld [vmem:[%s1576_s29 + $0x58] sm:$0xff]   ;;  %v1195_v16 = vld [vmem:[%s1576_s29 + $0x60] sm:$0xff]   ;;  %v1197_v18 = vld [vmem:[%s1576_s29 + $0x68] sm:$0xff]   ;;  %p1761_p2 = scmp.ne.s32.totalorder %s1748_s13, 0  ;;  %s1384_s16 = smov [#allocation8]  }
 0x231   : > { %1071 = vmatprep.subr.bf16.mxu0 %v1189_v9  ;;  %v1194_v15 = vld [vmem:[%s1576_s29 + $0x18] sm:$0xff]   ;;  %v1196_v17 = vld [vmem:[%s1576_s29 + $0x20] sm:$0xff]   ;;  %v1198_v21 = vld [vmem:[%s1576_s29 + $0x28] sm:$0xff]   ;;  %s1271_s19 = sshll.u32 %s1384_s16, 4  ;;  %s1272_s19 = int_to_ptr.vmem [resolvable:$false] %s1271_s19 }
 0x232   : > { %v1199_v22 = vld [vmem:[%s1576_s29 + $0x70] sm:$0xff]   ;;  %v1201_v24 = vld [vmem:[%s1576_s29 + $0x78] sm:$0xff]   ;;  %s1273_s15 = scalar_lea.vmem %s1272_s19, 256  ;;  %p1274_p5 = scmp.lt.s32.totalorder %s1657_s12, %s1272_s19 }
 0x233   : > { %v1200_v23 = vld [vmem:[%s1576_s29 + $0x30] sm:$0xff]   ;;  %v1202_v25 = vld [vmem:[%s1576_s29 + $0x38] sm:$0xff]  }
 0x234   : > { %1072 = vmatpush3.bf16.msra.mxu0 %v1190_v10  ;;  %v669_v19 = vld [vmem:[#allocation2] sm:$0xff] }
 0x235   : > { %1073 = vmatprep.subr.bf16.mxu0 %v1191_v11  ;;  %v1045_v20 = vcombine.high %v669_v19, %v669_v19  ;;  %v1044_v26 = vcombine.low %v669_v19, %v669_v19  ;;  %v1043_v28 = vld [vmem:[%s335_s17] ss:$0 sm:$0xff]  ;;  %s1267_s17 = scalar_lea.vmem %s1657_s12, 128 }
 0x236   : > { %p1268_p10 = scmp.ne.s32.totalorder %s1657_s12, %s1267_s17  ;;  %p1275_p11 = scmp.lt.s32.totalorder %s1273_s15, %s1267_s17 }
 0x237   : > { %844 = vmatprep.mubr.bf16.mxu0 %v1045_v20 }
 0x238   : > { %1074 = vmatpush3.bf16.msra.mxu0 %v1192_v12  ;;  %p1269_p4 = pnand %p1268_p10, %p1761_p2  ;;  %p1276_p13 = por %p1275_p11, %p1274_p5 }
 0x239   : > { %1075 = vmatprep.subr.bf16.mxu0 %v1193_v14 }
 0x23a   : > { %p1270_p1 = pneg %p1269_p4 }
 0x23c   : > { %1076 = vmatpush3.bf16.msra.mxu0 %v1194_v15  ;;  %p1277_p0 = pnand %p1276_p13, %p1270_p1 }
 0x23d   : > { %1077 = vmatprep.subr.bf16.mxu0 %v1195_v16 }
 0x240   : > { %1078 = vmatpush3.bf16.msra.mxu0 %v1196_v17 }
 0x241   : > { %1079 = vmatprep.subr.bf16.mxu0 %v1197_v18 }
 0x244   : > { %1080 = vmatpush3.bf16.msra.mxu0 %v1198_v21 }
 0x245   : > { %1081 = vmatprep.subr.bf16.mxu0 %v1199_v22 }
 0x248   : > { %1082 = vmatpush3.bf16.msra.mxu0 %v1200_v23 }
 0x249   : > { %1083 = vmatprep.subr.bf16.mxu0 %v1201_v24 }
 0x24c   : > { %1084 = vmatpush3.bf16.msra.mxu0 %v1202_v25 }
 0x24f   : > { %845 = vmatmul.mubr.bf16.vlgmr.msra.gmra.mrb[0].mxu0 %v1044_v26 }
 0x322   : > { %v1085_v27 = vpop.f32.mrb[0].mxu0 }
 0x323   : > { %v1086_v29 = vpop.f32.mrb[1].mxu0 }
 0x324   : > { %v1087_v30 = vadd.f32 %v1086_v29, %v1085_v27  ;;  %v1088_v31 = vpop.f32.mrb[2].mxu0 }
 0x325   : > { %v1089_v32 = vpop.f32.mrb[3].mxu0 }
 0x326   : > { %v847_v33 = vadd.f32 %v1087_v30, %v1043_v28 }
 0x328   : > { %v853_v34 = vsub.f32 0.0, %v847_v33  ;;  %852 = vst [vmem:[%s1592_s20] sm:$0xff] %v847_v33 }
 0x329   : > { %1280 = shalt.err (!%p1277_p0)
}
 0x32a   : > { %s1281_s20 = scalar_lea.hbm %s1655_s23, 128  ;;  %s1285_s8 = scalar_lea.hbm %s1738_s6, 256 }
 0x32b   : > { %p1282_p6 = scmp.ne.s32.totalorder %s1655_s23, %s1281_s20  ;;  %p1286_p3 = scmp.lt.u32.totalorder %s1655_s23, %s1738_s6 }
 0x32c   : > { %p1287_p8 = scmp.lt.u32.totalorder %s1285_s8, %s1281_s20  ;;  %p1289_p10 = scmp.lt.u32.totalorder %s1281_s20, %s1655_s23 }
 0x32d   : > { %p1283_p12 = pnand %p1282_p6, %p1761_p2 }
 0x32e   : > { %p1288_p9 = por %p1287_p8, %p1286_p3 }
 0x32f   : > { %p1284_p7 = pneg %p1283_p12 }
 0x330   : > { %p1290_p4 = por %p1289_p10, %p1288_p9 }
 0x332   : > { %p1291_p1 = pnand %p1290_p4, %p1284_p7 }
 0x334   : > { %1294 = shalt.err (!%p1291_p1)
}
 0x335   : > { %1101 = dma.vmem_to_hbm [thread:$0]  (%p1761_p2), %s1657_s12, 128, %s1655_s23, %s862_s11   ;;  %v854_v35 = vmul.f32 1.442695, %v853_v34 }
 0x336   : > { %s1065_s17 = sshll.u32 %s1447_s28, 6  ;;  %s893_s16 = sshll.u32 %s1594_s22, 4  ;;  %s1689_s16 = int_to_ptr.vmem [resolvable:$true] %s893_s16 }
 0x337   : > { %1205 = vpow2.f32 %v854_v35  ;;  %s1687_s20 = scalar_lea.hbm %s1739_s7, %s1065_s17  ;;  %s867_s12 = scalar_lea.sflag [#allocation10], %s1572_s9 }
 0x338   : > { %s1295_s23 = scalar_lea.vmem %s1689_s16, 64  ;;  %s1385_s28 = smov [#allocation9]  }
 0x339   : > { %p1296_p5 = scmp.ne.s32.totalorder %s1689_s16, %s1295_s23  ;;  %s1299_s11 = sshll.u32 %s1385_s28, 4  ;;  %s1300_s11 = int_to_ptr.vmem [resolvable:$false] %s1299_s11 }
 0x33a   : > { %s1301_s18 = scalar_lea.vmem %s1300_s11, 128  ;;  %p1302_p0 = scmp.lt.s32.totalorder %s1689_s16, %s1300_s11 }
 0x33b   : > { %p1297_p11 = pnand %p1296_p5, %p1761_p2  ;;  %p1303_p6 = scmp.lt.s32.totalorder %s1301_s18, %s1295_s23 }
 0x33d   : > { %p1298_p13 = pneg %p1297_p11  ;;  %p1304_p12 = por %p1303_p6, %p1302_p0 }
 0x33f   : > { %p1305_p7 = pnand %p1304_p12, %p1298_p13 }
 0x341   : > { %v1206_v36 = vpop.eup %1205 }
 0x342   : > { %v856_v13 = vadd.f32 1.0, %v1206_v36 }
 0x344   : > { %1207 = vrcp.f32 %v856_v13 }
 0x34e   : > { %v1208_v37 = vpop.eup %1207 }
 0x34f   : > { %v858_v38 = vmul.f32 %v1208_v37, %v847_v33 }
 0x351   : > { %v859_v39 = vpack.c.bf16 %v858_v38, %v858_v38 }
 0x353   : > { %860 = vst [vmem:[%s1594_s22] sm:$0xf] %v859_v39 }
 0x354   : > { %1308 = shalt.err (!%p1305_p7)
}
 0x355   : > { %s1309_s9 = scalar_lea.hbm %s1687_s20, 64  ;;  %s1313_s8 = scalar_lea.hbm %s1739_s7, 128 }
 0x356   : > { %p1310_p3 = scmp.ne.s32.totalorder %s1687_s20, %s1309_s9  ;;  %p1314_p10 = scmp.lt.u32.totalorder %s1687_s20, %s1739_s7 }
 0x357   : > { %p1315_p4 = scmp.lt.u32.totalorder %s1313_s8, %s1309_s9  ;;  %p1317_p5 = scmp.lt.u32.totalorder %s1309_s9, %s1687_s20 }
 0x358   : > { %p1311_p8 = pnand %p1310_p3, %p1761_p2 }
 0x359   : > { %p1316_p1 = por %p1315_p4, %p1314_p10 }
 0x35a   : > { %p1312_p9 = pneg %p1311_p8 }
 0x35b   : > { %p1318_p11 = por %p1317_p5, %p1316_p1 }
 0x35d   : > { %p1319_p13 = pnand %p1318_p11, %p1312_p9 }
 0x35f   : > { %1322 = shalt.err (!%p1319_p13)
}
 0x360   : > { %1102 = dma.vmem_to_hbm [thread:$0]  (%p1761_p2), %s1689_s16, 64, %s1687_s20, %s867_s12  }
 0x361 PF: > { %s905_s17 = sand.u32 1, %s1357_s24   ;;  %p1762_p0 = scmp.ne.s32.totalorder %s1749_s14, 0 }
 0x362   : > { %p1763_p6 = scmp.ge.s32.totalorder %s1369_s27, 2  ;;  %s906_s19 = scalar_lea.sflag [#allocation5], %s905_s17 }
 0x364   : > { %p1114_p12 = pnand %p1763_p6, %p1762_p0 }
 0x366   : > { %1348 = dma.done.wait (!%p1114_p12), %s906_s19, 128  }
 0x367   : > { %1350 = vsyncadd (!%p1114_p12), %s906_s19, 4294967168  ;;  %s915_s15 = scalar_lea.sflag [#allocation10], %s905_s17 }
 0x368   : > { %1352 = dma.done.wait (!%p1114_p12), %s915_s15, 64  }
 0x369   : > { %1354 = vsyncadd (!%p1114_p12), %s915_s15, 4294967232  ;;  %s1764_s13 = sld [smem:[#allocation15_spill]]  ;;  %p25_p2 = scmp.ge.s32.totalorder %s1451_s30, 4  }
 0x36a   : > { %s1765_s24 = smov %s1361_s25  ;;  %s1766_s25 = smov %s1365_s26 }
 0x36b   : > { %s1768_s27 = smov %s1451_s30  ;;  %27 = sbr.rel (!%p25_p2) target bundleno = 8 (0x8), region = 118 }
 0x36f   : > { %s1767_s26 = smov %s1764_s13 }
 0x372   :  { %920 = vsyncpa [#allocation4], 1 }
 0x373   :  { %922 = vsyncpa [#allocation4 + $0x1], 1 }
 0x374   :  { %923 = vsyncpa [#allocation7], 1 }
 0x375   :  { %925 = vsyncpa [#allocation7 + $0x1], 1 }
 0x376   :  { %926 = vsyncpa [#allocation5], 1 }
 0x377   :  { %928 = vsyncpa [#allocation5 + $0x1], 1 }
 0x378   :  { %929 = vsyncpa [#allocation10], 1 }
 0x379   :  { %931 = vsyncpa [#allocation10 + $0x1], 1 }

</bundles_post_ra>
